<compile_context>
chip_gen: v5e
topology: v5e:2x2
jax: 0.10.0
libtpu: 0.0.40
codegen_flags: <defaults>
</compile_context>

<pallas_src>
import functools

import jax
import jax.numpy as jnp
from jax.experimental import pallas as pl
from jax.experimental.pallas import tpu as pltpu


def _round_up(x: int, m: int) -> int:
    return (x + m - 1) // m * m


def _cdiv(a: int, b: int) -> int:
    return -(-a // b)


def _vmem_capacity_bytes() -> int:
    try:
        info = pltpu.get_tpu_info()
        cap = getattr(info, "vmem_capacity_bytes", None)
        if cap:
            return int(cap)
    except Exception:
        pass
    return 64 * 2 ** 20  # conservative fallback: v7x per-core VMEM


def _vmem_estimate(tn, Dp, tm, m_blocks, at_itemsize, at_dbuf):
    f32 = 4
    z_buf = 2 * tn * Dp * f32                 # streamed row tiles (double-buffered)
    out_buf = 2 * tn * Dp * f32
    if m_blocks == 1:                          # At / b / pivot@At resident
        at_buf = at_dbuf * Dp * tm * at_itemsize
        vec_buf = at_dbuf * 2 * tm * f32
    else:                                      # At streamed along the M grid axis
        at_buf = 2 * Dp * tm * at_itemsize
        vec_buf = 2 * 2 * tm * f32
    pivot_buf = Dp * f32
    interm = 5 * tn * tm * f32                 # zAt / sign_arg / denom / recip / alpha
    scratch = tn * 128 * f32                   # running-max scratch (lane-padded)
    return z_buf + out_buf + at_buf + vec_buf + pivot_buf + interm + scratch


def _pick_tiles(N, Dp, Mp, at_itemsize, tn_max, tm_max, budget, at_dbuf):
    # ---- M tiling: keep At resident if it fits, else stream (Dp, tm) blocks. ----
    tm_cap = None
    if tm_max is not None:
        tm_cap = max(128, int(tm_max) // 128 * 128)

    resident_bytes = at_dbuf * Dp * Mp * at_itemsize
    if resident_bytes <= budget // 2 and (tm_cap is None or tm_cap >= Mp):
        tm, m_blocks = Mp, 1
    else:
        tm = (budget // 2) // (2 * Dp * at_itemsize)
        tm = max(128, tm // 128 * 128)
        if tm_cap is not None:
            tm = min(tm, tm_cap)
        tm = min(tm, Mp)
        Mp = _round_up(Mp, tm)
        m_blocks = Mp // tm

    # ---- Row tiling: biggest multiple of 8 that fits; >= 2 row steps so both
    # v7x TensorCores get work under the "parallel" row axis. ----
    tn = max(8, min(int(tn_max), 1024) // 8 * 8)
    tn = min(tn, max(8, _round_up(_cdiv(N, 2), 8)))
    while tn > 8 and _vmem_estimate(tn, Dp, tm, m_blocks, at_itemsize, at_dbuf) > budget:
        tn = max(8, (tn // 2) // 8 * 8)
    return tn, tm, m_blocks, Mp


def _balanced_step_kernel(z_ref, at_ref, b_ref, pat_ref, pivot_ref, out_ref, amax_ref):
    j = pl.program_id(1)

    @pl.when(j == 0)
    def _init():
        amax_ref[...] = jnp.zeros_like(amax_ref)

    z = z_ref[...]                                    # (tn, Dp) f32 (always)
    at = at_ref[...]                                  # (Dp, tm) f32 or bf16

    # Single MXU matmul per (row, constraint) tile; f32 accumulation.
    zAt = jnp.dot(z.astype(at.dtype), at, preferred_element_type=jnp.float32)

    sign_arg = zAt - b_ref[...]                       # (tn, tm)
    ind = sign_arg >= 0.0

    # ray @ At == pivot @ At - z @ At (pivot @ At precomputed in the wrapper).
    denom = jnp.minimum(pat_ref[...] - zAt, -1e-9)

    # Approx reciprocal on the EUP slot + one Newton refinement (~exact).
    recip = pl.reciprocal(denom, approx=True)
    recip = recip * (2.0 - denom * recip)
    alpha = -sign_arg * recip

    # where() so inactive / padded columns contribute a clean 0; the max over
    # an all-inactive row is then 0, making the original any(ind) gate redundant.
    masked = jnp.where(ind, alpha, 0.0)
    blk_max = jnp.max(masked, axis=1, keepdims=True)  # (tn, 1)
    amax_ref[...] = jnp.maximum(amax_ref[...], blk_max)

    @pl.when(j == pl.num_programs(1) - 1)
    def _finalize():
        ray = pivot_ref[...] - z                      # (tn, Dp)
        out_ref[...] = z + amax_ref[...] * ray


@functools.partial(
    jax.jit,
    static_argnames=("tn_max", "tm_max", "use_bf16_matmul", "single_buffer_resident"))
def _balanced_step_impl(z, At, b, pivot, *, tn_max, tm_max, use_bf16_matmul,
                        single_buffer_resident):
    N, D = z.shape
    D2, M = At.shape
    assert D2 == D, "At must be (D, M) (i.e. A transposed)"

    f32 = jnp.float32
    z = z.astype(f32)
    At = At.astype(f32)
    b = b.astype(f32)
    pivot = pivot.astype(f32)

    Dp = _round_up(D, 128)
    Mp = _round_up(M, 128)
    at_itemsize = 2 if use_bf16_matmul else 4
    at_dbuf = 1 if single_buffer_resident else 2

    capacity = _vmem_capacity_bytes()
    vmem_limit = int(capacity * 0.8)   # ~107 MiB on v5e/v6e, ~51 MiB on v7x
    budget = int(capacity * 0.7)       # tile-picking budget; leaves compiler headroom

    tn, tm, m_blocks, Mp = _pick_tiles(N, Dp, Mp, at_itemsize, tn_max, tm_max,
                                       budget, at_dbuf)

    # z / out: skip the padded wrapper copy (an extra HBM pass in a mem-bound
    # kernel) when layouts are already clean; ragged last row tiles are handled
    # by Pallas partial blocks + masked stores.
    if Dp == D and N % 8 == 0:
        z_in, Nz = z, N
    else:
        Nz = _round_up(N, tn)
        z_in = jnp.zeros((Nz, Dp), f32).at[:N, :D].set(z)
    num_row_blocks = _cdiv(Nz, tn)

    # Constraint-side operands (small). Padded constraints never activate:
    # zero At columns with b = 1 give sign_arg = -1 < 0.
    At_p = At if (Dp, Mp) == (D, M) else jnp.zeros((Dp, Mp), f32).at[:D, :M].set(At)
    b_p = b.reshape(1, M) if Mp == M else jnp.ones((1, Mp), f32).at[0, :M].set(b)
    pivot_p = (pivot.reshape(1, D) if Dp == D
               else jnp.zeros((1, Dp), f32).at[0, :D].set(pivot))
    pAt_p = pivot_p @ At_p                     # (1, Mp): in-kernel ray@At = pAt - z@At

    At_mm = At_p.astype(jnp.bfloat16) if use_bf16_matmul else At_p

    def const_spec(shape):
        if single_buffer_resident:
            return pl.BlockSpec(shape, lambda i, j: (0, 0), pipeline_mode=pl.Buffered(1))
        return pl.BlockSpec(shape, lambda i, j: (0, 0))

    if m_blocks == 1:
        at_spec = const_spec((Dp, tm))
        b_spec = const_spec((1, tm))
        pat_spec = const_spec((1, tm))
    else:
        at_spec = pl.BlockSpec((Dp, tm), lambda i, j: (0, j))
        b_spec = pl.BlockSpec((1, tm), lambda i, j: (0, j))
        pat_spec = pl.BlockSpec((1, tm), lambda i, j: (0, j))
    pivot_spec = const_spec((1, Dp))

    out_p = pl.pallas_call(
        _balanced_step_kernel,
        out_shape=jax.ShapeDtypeStruct((Nz, Dp), f32),
        grid_spec=pltpu.PrefetchScalarGridSpec(
            num_scalar_prefetch=0,
            grid=(num_row_blocks, m_blocks),
            in_specs=[
                pl.BlockSpec((tn, Dp), lambda i, j: (i, 0)),   # z (streamed rows)
                at_spec,                                       # At
                b_spec,                                        # b
                pat_spec,                                      # pivot @ At
                pivot_spec,                                    # pivot
            ],
            out_specs=pl.BlockSpec((tn, Dp), lambda i, j: (i, 0)),
            scratch_shapes=[pltpu.VMEM((tn, 1), jnp.float32)],
        ),
        compiler_params=pltpu.CompilerParams(
            dimension_semantics=("parallel", "arbitrary"),
            vmem_limit_bytes=vmem_limit,
        ),
    )(z_in, At_mm, b_p, pAt_p, pivot_p)

    if (Nz, Dp) == (N, D):
        return out_p
    return out_p[:N, :D]


def balanced_step_to_interior(z, At, b, pivot, *, tn_max=256, tm_max=None,
                              use_bf16_matmul=False):
    """z: (N, D); At: (D, M) == A.T; b: (M,); pivot: (D,). Returns (N, D) f32."""
    kwargs = dict(tn_max=tn_max, tm_max=tm_max, use_bf16_matmul=use_bf16_matmul)
    try:
        return _balanced_step_impl(z, At, b, pivot, single_buffer_resident=True, **kwargs)
    except Exception:
        # pipeline_mode=pl.Buffered(1) (single-buffered resident operands) not
        # supported on this jax/libtpu combo -> fall back to default buffering.
        return _balanced_step_impl(z, At, b, pivot, single_buffer_resident=False, **kwargs)


def _reference(z, At, b, pivot):
    # Direct transcription of the PyTorch forward.
    sign_arg = z @ At - b[None, :]
    ind = sign_arg >= 0
    ray = pivot[None, :] - z
    alpha = -sign_arg / jnp.minimum(ray @ At, -1e-9)
    common_alpha = jnp.max(alpha * ind, axis=1)
    common_ind = jnp.any(ind, axis=1)
    return z + common_ind[:, None] * (common_alpha[:, None] * ray)


if __name__ == "__main__":
    key = jax.random.PRNGKey(0)

    def make_case(ka, kz, kp, N, D, M, pivot_scale):
        A = jax.random.normal(ka, (M, D), dtype=jnp.float32)
        pivot = pivot_scale * jax.random.normal(kp, (D,), dtype=jnp.float32)
        b = A @ pivot + 1.0                    # pivot strictly interior
        z = 2.0 * jax.random.normal(kz, (N, D), dtype=jnp.float32)
        return z, A.T, b, pivot

    cases = [
        # (N, D, M, pivot_scale, tm_max)
        (16, 32, 64, 0.0, None),      # padded D/M path (original small shape)
        (32, 128, 96, 0.05, None),    # lane-clean D: no wrapper copy of z
        (24, 128, 130, 0.0, None),    # ragged last row tile via partial blocks
        (16, 32, 200, 0.0, 128),      # forced M-tiling path (2 constraint blocks)
    ]

    for idx, (N, D, M, ps, tm_max) in enumerate(cases):
        ka, kz, kp = jax.random.split(jax.random.fold_in(key, idx), 3)
        z, At, b, pivot = make_case(ka, kz, kp, N, D, M, ps)
        out = balanced_step_to_interior(z, At, b, pivot, tm_max=tm_max)
        out = jax.block_until_ready(out)
        ref = _reference(z, At, b, pivot)
        assert out.shape == ref.shape, f"shape mismatch in case {idx}"
        assert jnp.allclose(out, ref, atol=1e-3, rtol=1e-3), f"mismatch in case {idx}"

    print("KERNEL_OK")
</pallas_src>

<mosaic_0001>
module attributes {stable_mosaic.version = 11 : i64} {
  func.func @_balanced_step_kernel(%arg0: i32, %arg1: i32, %arg2: memref<8x128xf32, #tpu.memory_space<vmem>>, %arg3: memref<128x128xf32, #tpu.memory_space<vmem>>, %arg4: memref<1x128xf32, #tpu.memory_space<vmem>>, %arg5: memref<1x128xf32, #tpu.memory_space<vmem>>, %arg6: memref<1x128xf32, #tpu.memory_space<vmem>>, %arg7: memref<8x128xf32, #tpu.memory_space<vmem>>, %arg8: memref<8x1xf32, #tpu.memory_space<vmem>>) attributes {dimension_semantics = [#tpu.dimension_semantics<parallel>, #tpu.dimension_semantics<arbitrary>], iteration_bounds = array<i64: 2, 1>, scalar_prefetch = 0 : i64, scratch_operands = 1 : i64, tpu.core_type = #tpu.core_type<tc>, window_params = [{transform_indices = @transform_0, window_bounds = array<i64: 8, 128>}, {pipeline_mode = #tpu.pipeline_mode<synchronous>, transform_indices = @transform_1, window_bounds = array<i64: 128, 128>}, {pipeline_mode = #tpu.pipeline_mode<synchronous>, transform_indices = @transform_2, window_bounds = array<i64: 1, 128>}, {pipeline_mode = #tpu.pipeline_mode<synchronous>, transform_indices = @transform_3, window_bounds = array<i64: 1, 128>}, {pipeline_mode = #tpu.pipeline_mode<synchronous>, transform_indices = @transform_4, window_bounds = array<i64: 1, 128>}, {transform_indices = @transform_5, window_bounds = array<i64: 8, 128>}]} {
    %c0_i32 = arith.constant 0 : i32
    %0 = arith.cmpi eq, %arg1, %c0_i32 : i32
    %1 = arith.extui %0 : i1 to i32
    %c0_i32_0 = arith.constant 0 : i32
    %2 = arith.cmpi ne, %1, %c0_i32_0 : i32
    scf.if %2 {
      %cst_20 = arith.constant 0.000000e+00 : f32
      %34 = vector.broadcast %cst_20 : f32 to vector<8x1xf32>
      %c0_21 = arith.constant 0 : index
      %c0_22 = arith.constant 0 : index
      %35 = vector.load %arg8[%c0_21, %c0_22] : memref<8x1xf32, #tpu.memory_space<vmem>>, vector<8x1xf32>
      tpu.vector_store %arg8[%c0_21, %c0_22], %34 {strides = array<i32>} : memref<8x1xf32, #tpu.memory_space<vmem>>, vector<8x1xf32>,
    } else {
    }
    %c0 = arith.constant 0 : index
    %c0_1 = arith.constant 0 : index
    %3 = vector.load %arg2[%c0, %c0_1] : memref<8x128xf32, #tpu.memory_space<vmem>>, vector<8x128xf32>
    %c0_2 = arith.constant 0 : index
    %c0_3 = arith.constant 0 : index
    %4 = vector.load %arg3[%c0_2, %c0_3] : memref<128x128xf32, #tpu.memory_space<vmem>>, vector<128x128xf32>
    %cst = arith.constant dense<0.000000e+00> : vector<8x128xf32>
    %5 = tpu.matmul %3, %4, %cst {dimension_numbers = #tpu.dot_dimension_numbers<[1], [0], [0], [1], [0, 0, 1, 1], [], []>} : vector<8x128xf32>, vector<128x128xf32>, vector<8x128xf32> -> vector<8x128xf32>
    %c0_4 = arith.constant 0 : index
    %c0_5 = arith.constant 0 : index
    %6 = vector.load %arg4[%c0_4, %c0_5] : memref<1x128xf32, #tpu.memory_space<vmem>>, vector<1x128xf32>
    %7 = vector.broadcast %6 : vector<1x128xf32> to vector<8x128xf32>
    %8 = arith.subf %5, %7 : vector<8x128xf32>
    %cst_6 = arith.constant 0.000000e+00 : f32
    %9 = vector.broadcast %cst_6 : f32 to vector<8x128xf32>
    %10 = arith.cmpf oge, %8, %9 : vector<8x128xf32>
    %c0_7 = arith.constant 0 : index
    %c0_8 = arith.constant 0 : index
    %11 = vector.load %arg5[%c0_7, %c0_8] : memref<1x128xf32, #tpu.memory_space<vmem>>, vector<1x128xf32>
    %12 = vector.broadcast %11 : vector<1x128xf32> to vector<8x128xf32>
    %13 = arith.subf %12, %5 : vector<8x128xf32>
    %cst_9 = arith.constant -9.99999971E-10 : f32
    %14 = vector.broadcast %cst_9 : f32 to vector<8x128xf32>
    %15 = arith.minimumf %13, %14 : vector<8x128xf32>
    %16 = tpu.reciprocal %15 {approx = true} : vector<8x128xf32> -> vector<8x128xf32>
    %17 = arith.mulf %15, %16 : vector<8x128xf32>
    %cst_10 = arith.constant 2.000000e+00 : f32
    %18 = vector.broadcast %cst_10 : f32 to vector<8x128xf32>
    %19 = arith.subf %18, %17 : vector<8x128xf32>
    %20 = arith.mulf %16, %19 : vector<8x128xf32>
    %cst_11 = arith.constant 0.000000e+00 : f32
    %21 = vector.broadcast %cst_11 : f32 to vector<8x128xf32>
    %22 = arith.subf %21, %8 : vector<8x128xf32>
    %23 = arith.mulf %22, %20 : vector<8x128xf32>
    %cst_12 = arith.constant 0.000000e+00 : f32
    %24 = vector.broadcast %cst_12 : f32 to vector<8x128xf32>
    %25 = arith.select %10, %23, %24 : vector<8x128xi1>, vector<8x128xf32>
    %cst_13 = arith.constant dense<0xFF800000> : vector<8xf32>
    %26 = vector.multi_reduction <maximumf>, %25, %cst_13 [1] : vector<8x128xf32> to vector<8xf32>
    %27 = vector.shape_cast %26 : vector<8xf32> to vector<8x1xf32>
    %c0_14 = arith.constant 0 : index
    %c0_15 = arith.constant 0 : index
    %28 = vector.load %arg8[%c0_14, %c0_15] : memref<8x1xf32, #tpu.memory_space<vmem>>, vector<8x1xf32>
    %29 = arith.maximumf %28, %27 : vector<8x1xf32>
    %c0_16 = arith.constant 0 : index
    %c0_17 = arith.constant 0 : index
    %30 = vector.load %arg8[%c0_16, %c0_17] : memref<8x1xf32, #tpu.memory_space<vmem>>, vector<8x1xf32>
    tpu.vector_store %arg8[%c0_16, %c0_17], %29 {strides = array<i32>} : memref<8x1xf32, #tpu.memory_space<vmem>>, vector<8x1xf32>,
    %c0_i32_18 = arith.constant 0 : i32
    %31 = arith.cmpi eq, %arg1, %c0_i32_18 : i32
    %32 = arith.extui %31 : i1 to i32
    %c0_i32_19 = arith.constant 0 : i32
    %33 = arith.cmpi ne, %32, %c0_i32_19 : i32
    scf.if %33 {
      %c0_20 = arith.constant 0 : index
      %c0_21 = arith.constant 0 : index
      %34 = vector.load %arg6[%c0_20, %c0_21] : memref<1x128xf32, #tpu.memory_space<vmem>>, vector<1x128xf32>
      %35 = vector.broadcast %34 : vector<1x128xf32> to vector<8x128xf32>
      %36 = arith.subf %35, %3 : vector<8x128xf32>
      %c0_22 = arith.constant 0 : index
      %c0_23 = arith.constant 0 : index
      %37 = vector.load %arg8[%c0_22, %c0_23] : memref<8x1xf32, #tpu.memory_space<vmem>>, vector<8x1xf32>
      %38 = vector.broadcast %37 : vector<8x1xf32> to vector<8x128xf32>
      %39 = arith.mulf %38, %36 : vector<8x128xf32>
      %40 = arith.addf %3, %39 : vector<8x128xf32>
      %c0_24 = arith.constant 0 : index
      %c0_25 = arith.constant 0 : index
      %41 = vector.load %arg7[%c0_24, %c0_25] : memref<8x128xf32, #tpu.memory_space<vmem>>, vector<8x128xf32>
      tpu.vector_store %arg7[%c0_24, %c0_25], %40 {strides = array<i32>} : memref<8x128xf32, #tpu.memory_space<vmem>>, vector<8x128xf32>,
    } else {
    }
    return
  }
  func.func @transform_0(%arg0: i32, %arg1: i32) -> (i32, i32) {
    %c0_i32 = arith.constant 0 : i32
    %c0_i32_0 = arith.constant 0 : i32
    return %arg0, %c0_i32 : i32, i32
  }
  func.func @transform_1(%arg0: i32, %arg1: i32) -> (i32, i32) {
    %c0_i32 = arith.constant 0 : i32
    %c0_i32_0 = arith.constant 0 : i32
    %c0_i32_1 = arith.constant 0 : i32
    return %c0_i32, %c0_i32_0 : i32, i32
  }
  func.func @transform_2(%arg0: i32, %arg1: i32) -> (i32, i32) {
    %c0_i32 = arith.constant 0 : i32
    %c0_i32_0 = arith.constant 0 : i32
    %c0_i32_1 = arith.constant 0 : i32
    return %c0_i32, %c0_i32_0 : i32, i32
  }
  func.func @transform_3(%arg0: i32, %arg1: i32) -> (i32, i32) {
    %c0_i32 = arith.constant 0 : i32
    %c0_i32_0 = arith.constant 0 : i32
    %c0_i32_1 = arith.constant 0 : i32
    return %c0_i32, %c0_i32_0 : i32, i32
  }
  func.func @transform_4(%arg0: i32, %arg1: i32) -> (i32, i32) {
    %c0_i32 = arith.constant 0 : i32
    %c0_i32_0 = arith.constant 0 : i32
    %c0_i32_1 = arith.constant 0 : i32
    return %c0_i32, %c0_i32_0 : i32, i32
  }
  func.func @transform_5(%arg0: i32, %arg1: i32) -> (i32, i32) {
    %c0_i32 = arith.constant 0 : i32
    %c0_i32_0 = arith.constant 0 : i32
    return %arg0, %c0_i32 : i32, i32
  }
}

module attributes {stable_mosaic.version = 11 : i64} {
  func.func @_balanced_step_kernel(%arg0: i32, %arg1: i32, %arg2: memref<8x128xf32, #tpu.memory_space<vmem>>, %arg3: memref<128x128xf32, #tpu.memory_space<vmem>>, %arg4: memref<1x128xf32, #tpu.memory_space<vmem>>, %arg5: memref<1x128xf32, #tpu.memory_space<vmem>>, %arg6: memref<1x128xf32, #tpu.memory_space<vmem>>, %arg7: memref<8x128xf32, #tpu.memory_space<vmem>>, %arg8: memref<8x1xf32, #tpu.memory_space<vmem>>) attributes {dimension_semantics = [#tpu.dimension_semantics<parallel>, #tpu.dimension_semantics<arbitrary>], iteration_bounds = array<i64: 2, 1>, scalar_prefetch = 0 : i64, scratch_operands = 1 : i64, tpu.core_type = #tpu.core_type<tc>, window_params = [{transform_indices = @transform_0, window_bounds = array<i64: 8, 128>}, {pipeline_mode = #tpu.pipeline_mode<synchronous>, transform_indices = @transform_1, window_bounds = array<i64: 128, 128>}, {pipeline_mode = #tpu.pipeline_mode<synchronous>, transform_indices = @transform_2, window_bounds = array<i64: 1, 128>}, {pipeline_mode = #tpu.pipeline_mode<synchronous>, transform_indices = @transform_3, window_bounds = array<i64: 1, 128>}, {pipeline_mode = #tpu.pipeline_mode<synchronous>, transform_indices = @transform_4, window_bounds = array<i64: 1, 128>}, {transform_indices = @transform_5, window_bounds = array<i64: 8, 128>}]} {
    %c0_i32 = arith.constant 0 : i32
    %0 = arith.cmpi eq, %arg1, %c0_i32 : i32
    %1 = arith.extui %0 : i1 to i32
    %c0_i32_0 = arith.constant 0 : i32
    %2 = arith.cmpi ne, %1, %c0_i32_0 : i32
    scf.if %2 {
      %cst_20 = arith.constant 0.000000e+00 : f32
      %34 = vector.broadcast %cst_20 : f32 to vector<8x1xf32>
      %c0_21 = arith.constant 0 : index
      %c0_22 = arith.constant 0 : index
      %35 = vector.load %arg8[%c0_21, %c0_22] : memref<8x1xf32, #tpu.memory_space<vmem>>, vector<8x1xf32>
      tpu.vector_store %arg8[%c0_21, %c0_22], %34 {strides = array<i32>} : memref<8x1xf32, #tpu.memory_space<vmem>>, vector<8x1xf32>,
    } else {
    }
    %c0 = arith.constant 0 : index
    %c0_1 = arith.constant 0 : index
    %3 = vector.load %arg2[%c0, %c0_1] : memref<8x128xf32, #tpu.memory_space<vmem>>, vector<8x128xf32>
    %c0_2 = arith.constant 0 : index
    %c0_3 = arith.constant 0 : index
    %4 = vector.load %arg3[%c0_2, %c0_3] : memref<128x128xf32, #tpu.memory_space<vmem>>, vector<128x128xf32>
    %cst = arith.constant dense<0.000000e+00> : vector<8x128xf32>
    %5 = tpu.matmul %3, %4, %cst {dimension_numbers = #tpu.dot_dimension_numbers<[1], [0], [0], [1], [0, 0, 1, 1], [], []>} : vector<8x128xf32>, vector<128x128xf32>, vector<8x128xf32> -> vector<8x128xf32>
    %c0_4 = arith.constant 0 : index
    %c0_5 = arith.constant 0 : index
    %6 = vector.load %arg4[%c0_4, %c0_5] : memref<1x128xf32, #tpu.memory_space<vmem>>, vector<1x128xf32>
    %7 = vector.broadcast %6 : vector<1x128xf32> to vector<8x128xf32>
    %8 = arith.subf %5, %7 : vector<8x128xf32>
    %cst_6 = arith.constant 0.000000e+00 : f32
    %9 = vector.broadcast %cst_6 : f32 to vector<8x128xf32>
    %10 = arith.cmpf oge, %8, %9 : vector<8x128xf32>
    %c0_7 = arith.constant 0 : index
    %c0_8 = arith.constant 0 : index
    %11 = vector.load %arg5[%c0_7, %c0_8] : memref<1x128xf32, #tpu.memory_space<vmem>>, vector<1x128xf32>
    %12 = vector.broadcast %11 : vector<1x128xf32> to vector<8x128xf32>
    %13 = arith.subf %12, %5 : vector<8x128xf32>
    %cst_9 = arith.constant -9.99999971E-10 : f32
    %14 = vector.broadcast %cst_9 : f32 to vector<8x128xf32>
    %15 = arith.minimumf %13, %14 : vector<8x128xf32>
    %16 = tpu.reciprocal %15 {approx = true} : vector<8x128xf32> -> vector<8x128xf32>
    %17 = arith.mulf %15, %16 : vector<8x128xf32>
    %cst_10 = arith.constant 2.000000e+00 : f32
    %18 = vector.broadcast %cst_10 : f32 to vector<8x128xf32>
    %19 = arith.subf %18, %17 : vector<8x128xf32>
    %20 = arith.mulf %16, %19 : vector<8x128xf32>
    %cst_11 = arith.constant 0.000000e+00 : f32
    %21 = vector.broadcast %cst_11 : f32 to vector<8x128xf32>
    %22 = arith.subf %21, %8 : vector<8x128xf32>
    %23 = arith.mulf %22, %20 : vector<8x128xf32>
    %cst_12 = arith.constant 0.000000e+00 : f32
    %24 = vector.broadcast %cst_12 : f32 to vector<8x128xf32>
    %25 = arith.select %10, %23, %24 : vector<8x128xi1>, vector<8x128xf32>
    %cst_13 = arith.constant dense<0xFF800000> : vector<8xf32>
    %26 = vector.multi_reduction <maximumf>, %25, %cst_13 [1] : vector<8x128xf32> to vector<8xf32>
    %27 = vector.shape_cast %26 : vector<8xf32> to vector<8x1xf32>
    %c0_14 = arith.constant 0 : index
    %c0_15 = arith.constant 0 : index
    %28 = vector.load %arg8[%c0_14, %c0_15] : memref<8x1xf32, #tpu.memory_space<vmem>>, vector<8x1xf32>
    %29 = arith.maximumf %28, %27 : vector<8x1xf32>
    %c0_16 = arith.constant 0 : index
    %c0_17 = arith.constant 0 : index
    %30 = vector.load %arg8[%c0_16, %c0_17] : memref<8x1xf32, #tpu.memory_space<vmem>>, vector<8x1xf32>
    tpu.vector_store %arg8[%c0_16, %c0_17], %29 {strides = array<i32>} : memref<8x1xf32, #tpu.memory_space<vmem>>, vector<8x1xf32>,
    %c0_i32_18 = arith.constant 0 : i32
    %31 = arith.cmpi eq, %arg1, %c0_i32_18 : i32
    %32 = arith.extui %31 : i1 to i32
    %c0_i32_19 = arith.constant 0 : i32
    %33 = arith.cmpi ne, %32, %c0_i32_19 : i32
    scf.if %33 {
      %c0_20 = arith.constant 0 : index
      %c0_21 = arith.constant 0 : index
      %34 = vector.load %arg6[%c0_20, %c0_21] : memref<1x128xf32, #tpu.memory_space<vmem>>, vector<1x128xf32>
      %35 = vector.broadcast %34 : vector<1x128xf32> to vector<8x128xf32>
      %36 = arith.subf %35, %3 : vector<8x128xf32>
      %c0_22 = arith.constant 0 : index
      %c0_23 = arith.constant 0 : index
      %37 = vector.load %arg8[%c0_22, %c0_23] : memref<8x1xf32, #tpu.memory_space<vmem>>, vector<8x1xf32>
      %38 = vector.broadcast %37 : vector<8x1xf32> to vector<8x128xf32>
      %39 = arith.mulf %38, %36 : vector<8x128xf32>
      %40 = arith.addf %3, %39 : vector<8x128xf32>
      %c0_24 = arith.constant 0 : index
      %c0_25 = arith.constant 0 : index
      %41 = vector.load %arg7[%c0_24, %c0_25] : memref<8x128xf32, #tpu.memory_space<vmem>>, vector<8x128xf32>
      tpu.vector_store %arg7[%c0_24, %c0_25], %40 {strides = array<i32>} : memref<8x128xf32, #tpu.memory_space<vmem>>, vector<8x128xf32>,
    } else {
    }
    return
  }
  func.func @transform_0(%arg0: i32, %arg1: i32) -> (i32, i32) {
    %c0_i32 = arith.constant 0 : i32
    %c0_i32_0 = arith.constant 0 : i32
    return %arg0, %c0_i32 : i32, i32
  }
  func.func @transform_1(%arg0: i32, %arg1: i32) -> (i32, i32) {
    %c0_i32 = arith.constant 0 : i32
    %c0_i32_0 = arith.constant 0 : i32
    %c0_i32_1 = arith.constant 0 : i32
    return %c0_i32, %c0_i32_0 : i32, i32
  }
  func.func @transform_2(%arg0: i32, %arg1: i32) -> (i32, i32) {
    %c0_i32 = arith.constant 0 : i32
    %c0_i32_0 = arith.constant 0 : i32
    %c0_i32_1 = arith.constant 0 : i32
    return %c0_i32, %c0_i32_0 : i32, i32
  }
  func.func @transform_3(%arg0: i32, %arg1: i32) -> (i32, i32) {
    %c0_i32 = arith.constant 0 : i32
    %c0_i32_0 = arith.constant 0 : i32
    %c0_i32_1 = arith.constant 0 : i32
    return %c0_i32, %c0_i32_0 : i32, i32
  }
  func.func @transform_4(%arg0: i32, %arg1: i32) -> (i32, i32) {
    %c0_i32 = arith.constant 0 : i32
    %c0_i32_0 = arith.constant 0 : i32
    %c0_i32_1 = arith.constant 0 : i32
    return %c0_i32, %c0_i32_0 : i32, i32
  }
  func.func @transform_5(%arg0: i32, %arg1: i32) -> (i32, i32) {
    %c0_i32 = arith.constant 0 : i32
    %c0_i32_0 = arith.constant 0 : i32
    return %arg0, %c0_i32 : i32, i32
  }
}

</mosaic_0001>

<bundles_post_ra>
// kernel: _balanced_step_impl.1
= control target key start
LH: loop header
LB: loop body
LE: loop exit
PB: predicated region body
PF: predicated region fallthrough
CT: control target
= control target key end

     0   :  { %10 = vsyncpa [#allocation4], 0  ;;  %s742_s0 = inlined_call_operand.vmem [shape: f32[16,128], index: 0, kind: input, shape index: {}]   ;;  %s743_s1 = inlined_call_operand.vmem [shape: f32[128,128], index: 1, kind: input, shape index: {}]   ;;  %s744_s2 = inlined_call_operand.vmem [shape: f32[1,128], index: 2, kind: input, shape index: {}]   ;;  %s745_s3 = inlined_call_operand.vmem [shape: f32[1,128], index: 3, kind: input, shape index: {}]   ;;  %s746_s4 = inlined_call_operand.vmem [shape: f32[1,128], index: 4, kind: input, shape index: {}]   ;;  %s747_s5 = inlined_call_operand.hbm [shape: f32[16,128], index: 5, kind: output, shape index: {}]  }
   0x1   :  { %12 = vsyncpa [#allocation4 + $0x1], 0  ;;  %s586_s18 = smov 0   ;;  %s588_s19 = smov 0  }
   0x2   :  { %s590_s20 = smov 0   ;;  %s592_s21 = smov 0  }
   0x3   :  { %s594_s22 = smov 0   ;;  %s596_s23 = smov 0  }
   0x4 LB: > { %s400_s24 = sadd.s32 4294967295, %s552_s23   ;;  %s401_s25 = sadd.s32 4294967294, %s552_s23   ;;  %s552_s23 = sphi %s596_s23, %s18_s23   ;;  %s548_s22 = sphi %s594_s22, %s754_s22   ;;  %s544_s21 = sphi %s592_s21, %s753_s21   ;;  %s540_s20 = sphi %s590_s20, %s752_s20   ;;  %s536_s19 = sphi %s588_s19, %s751_s19   ;;  %s532_s18 = sphi %s586_s18, %s750_s18  }
   0x5   : > { %s30_s26 = sadd.s32 1, %s548_s22  ;;  %s147_s27 = sadd.s32 1, %s540_s20 }
   0x6   : > { %p32_p0 = scmp.ge.s32.totalorder %s30_s26, 2  ;;  %p157_p1 = scmp.ne.s32.totalorder %s540_s20, %s536_s19 }
   0x7   : > { %p158_p2 = scmp.eq.s32.totalorder %s400_s24, 1  ;;  %p163_p3 = scmp.ne.s32.totalorder %s536_s19, %s532_s18 }
   0x8   : > { %s756_s26 = smov (%p32_p0, %s30_s26), 0  ;;  %p164_p5 = scmp.eq.s32.totalorder %s401_s25, 1 }
   0x9   : > { %p626_p4 = por %p158_p2, %p157_p1  ;;  %s144_s29 = ssub.s32 %s548_s22, %s756_s26 }
   0xa   : > { %p404_p6 = scmp.ge.s32.totalorder %s552_s23, 1  ;;  %p145_p7 = scmp.eq.s32.totalorder %s144_s29, 0 }
   0xb   : > { %p633_p8 = por %p164_p5, %p163_p3  ;;  %p201_p9 = scmp.lt.s32.totalorder %s552_s23, 3 }
   0xc   : > { %s639_s6 = scalar_select %p145_p7, %s540_s20, %s147_s27  }
   0xd   : > { %p202_p10 = pnand %p404_p6, %p201_p9 }
   0xe   : > { %p228_p11 = scmp.lt.s32.totalorder (!%p202_p10), %s544_s21, 1  ;;  %s225_s24 = sand.u32 (!%p202_p10), 1, %s536_s19  }
   0xf   : > { %205 = sbr.rel (%p202_p10) target bundleno = 446 (0x1be), region = 40  ;;  %s405_s29 = sshll.u32 (!%p202_p10), %s225_s24, 3 }
  0x10   : > { %s408_s7 = sshll.u32 (!%p202_p10), %s544_s21, 3 }
  0x11   : > { %s328_s10 = scalar_lea.hbm (!%p202_p10), %s747_s5, %s408_s7 }
  0x12   : > { %s332_s13 = sshll.u32 (!%p202_p10), %s328_s10, 4  ;;  %s333_s13 = int_to_ptr.hbm [resolvable:$true] %s332_s13 }
  0x13   : > { %s488_s15 = sshra.s32 (!%p202_p10), %s333_s13, 4  ;;  %s489_s15 = int_to_ptr.hbm [resolvable:$true] %s488_s15 }
  0x14   : > { %v254_v0 = vld [vmem:[%s743_s1 + $0x78] sm:$0xff]  ;;  %v253_v1 = vld [vmem:[%s743_s1 + $0x70] sm:$0xff]  ;;  %v252_v2 = vld [vmem:[%s743_s1 + $0x68] sm:$0xff]  ;;  %s229_s14 = scalar_select %p228_p11, %s544_s21, 1  ;;  %vm236_vm0 = vcmask 7168   ;;  %v554_v17 = vmov 0.0  }
  0x15   : > { %255 = vmatpush.msra.mxu0 %v254_v0  ;;  %v251_v3 = vld [vmem:[%s743_s1 + $0x60] sm:$0xff]  ;;  %v250_v4 = vld [vmem:[%s743_s1 + $0x58] sm:$0xff]  ;;  %v249_v5 = vld [vmem:[%s743_s1 + $0x50] sm:$0xff]  ;;  %237 = vst.msk [vmem:[#allocation2] sm:$0xff] %vm236_vm0, %v554_v17  ;;  %v555_v31 = vmov 0   ;;  %s490_s16 = scalar_lea.hbm %s489_s15, 8  ;;  %p495_p1 = scmp.lt.s32.totalorder %s489_s15, %s747_s5 }
  0x16   : > { %v248_v6 = vld [vmem:[%s743_s1 + $0x48] sm:$0xff]  ;;  %v247_v7 = vld [vmem:[%s743_s1 + $0x40] sm:$0xff]  ;;  %v246_v8 = vld [vmem:[%s743_s1 + $0x38] sm:$0xff]  ;;  %s406_s25 = sshll.u32 %s229_s14, 3  ;;  %468 = vset.pattern.permute.xlu0 %v555_v31  ;;  %s318_s14 = scalar_lea.sflag [#allocation4], %s225_s24 }
  0x17   : > { %256 = vmatpush.msra.mxu0 %v253_v1  ;;  %v245_v9 = vld [vmem:[%s743_s1 + $0x30] sm:$0xff]  ;;  %v244_v10 = vld [vmem:[%s743_s1 + $0x28] sm:$0xff]  ;;  %v243_v11 = vld [vmem:[%s743_s1 + $0x20] sm:$0xff]  ;;  %s231_s11 = scalar_lea.vmem %s742_s0, %s406_s25  ;;  %p491_p12 = scmp.ne.s32.totalorder %s489_s15, %s490_s16 }
  0x18   : > { %v242_v12 = vld [vmem:[%s743_s1 + $0x18] sm:$0xff]  ;;  %v241_v13 = vld [vmem:[%s743_s1 + $0x10] sm:$0xff]  ;;  %v240_v14 = vld [vmem:[%s743_s1 + $0x8] sm:$0xff]  ;;  %s494_s25 = scalar_lea.hbm %s747_s5, 16 }
  0x19   : > { %257 = vmatpush.msra.mxu0 %v252_v2  ;;  %v239_v15 = vld [vmem:[%s743_s1] sm:$0xff]  ;;  %p492_p13 = pnand %p491_p12, %p626_p4  ;;  %p496_p2 = scmp.lt.s32.totalorder %s494_s25, %s490_s16 }
  0x1a   : > { %v238_v16 = vld [vmem:[%s231_s11] sm:$0xff]  ;;  %s227_s11 = scalar_lea.vmem [#allocation3], %s405_s29 }
  0x1b   : > { %258 = vmatpush.msra.mxu0 %v251_v3  ;;  %v470_v18 = vld [vmem:[%s745_s3] ss:$0 sm:$0xff]  ;;  %s330_s12 = sshll.u32 %s227_s11, 4  ;;  %p493_p0 = pneg %p492_p13  ;;  %s331_s12 = int_to_ptr.vmem [resolvable:$true] %s330_s12 }
  0x1c   : > { %v469_v22 = vld [vmem:[%s744_s2] ss:$0 sm:$0xff]  ;;  %p497_p3 = por %p496_p2, %p495_p1 }
  0x1d   : > { %259 = vmatpush.msra.mxu0 %v250_v4  ;;  %v296_v32 = vld [vmem:[#allocation2] sm:$0xff] }
  0x1e   : > { %v471_v36 = vld [vmem:[%s746_s4] ss:$0 sm:$0xff]  ;;  %p498_p5 = pnand %p497_p3, %p493_p0 }
  0x1f   : > { %260 = vmatpush.msra.mxu0 %v249_v5  ;;  %v307_v37 = vsub.f32 %v471_v36, %v238_v16 }
  0x21   : > { %261 = vmatpush.msra.mxu0 %v248_v6 }
  0x23   : > { %262 = vmatpush.msra.mxu0 %v247_v7 }
  0x25   : > { %263 = vmatpush.msra.mxu0 %v246_v8 }
  0x27   : > { %264 = vmatpush.msra.mxu0 %v245_v9 }
  0x29   : > { %265 = vmatpush.msra.mxu0 %v244_v10 }
  0x2b   : > { %266 = vmatpush.msra.mxu0 %v243_v11 }
  0x2d   : > { %267 = vmatpush.msra.mxu0 %v242_v12 }
  0x2f   : > { %268 = vmatpush.msra.mxu0 %v241_v13 }
  0x31   : > { %269 = vmatpush.msra.mxu0 %v240_v14 }
  0x33   : > { %270 = vmatpush.msra.mxu0 %v239_v15 }
  0x34   : > { %271 = vmatmul.f32.vlgmr.msra.gmra.mxu0 %v238_v16 }
  0xb1   : > { %v272_v19 = vpop.f32.mrf.mxu0 }
  0xb2   : > { %v285_v20 = vsub.f32 %v470_v18, %v272_v19  ;;  %v279_v24 = vsub.f32 %v272_v19, %v469_v22 }
  0xb4   : > { %v286_v21 = vmin.f32 %v285_v20, -1e-09  ;;  %v291_v27 = vsub.f32 0.0, %v279_v24  ;;  %vm280_vm1 = vcmp.ge.f32.partialorder %v279_v24, 0.0 }
  0xb6   : > { %472 = vrcp.f32 %v286_v21 }
  0xbc   : > { %v473_v23 = vpop.eup %472 }
  0xbd   : > { %v288_v25 = vmul.f32 %v473_v23, %v286_v21 }
  0xbf   : > { %v289_v26 = vsub.f32 2.0, %v288_v25 }
  0xc1   : > { %v290_v28 = vmul.f32 %v473_v23, %v289_v26 }
  0xc3   : > { %v292_v29 = vmul.f32 %v291_v27, %v290_v28 }
  0xc5   : > { %v293_v30 = vsel %vm280_vm1, %v292_v29, 0.0 }
  0xc6   : > { %294 = vmax.xlane.f32.xlu0 %v293_v30 }
 0x139   : > { %v295_v33 = vpop.xlane.xlu0 %294 }
 0x13a   : > { %v297_v34 = vmax.f32 %v296_v32, %v295_v33 }
 0x13c   : > { %299 = vst.msk [vmem:[#allocation2] sm:$0xff] %vm236_vm0, %v297_v34 }
 0x143   : > { %v308_v35 = vld [vmem:[#allocation2] sm:$0xff] }
 0x144   : > { %311 = vperm.xlu0 %468, %v308_v35  }
 0x1b6   : > { %v312_v38 = vpop.permute.xlu0 %311 }
 0x1b7   : > { %v314_v39 = vmul.f32 %v312_v38, %v307_v37 }
 0x1b9   : > { %v315_v40 = vadd.f32 %v314_v39, %v238_v16 }
 0x1bb   : > { %316 = vst [vmem:[%s227_s11] sm:$0xff] %v315_v40 }
 0x1bc   : > { %501 = shalt.err (!%p498_p5)
}
 0x1bd   : > { %411 = dma.vmem_to_hbm [thread:$0]  (%p626_p4), %s331_s12, 128, %s333_s13, %s318_s14  }
 0x1be PF: > { %p417_p6 = scmp.ge.s32.totalorder %s552_s23, 2  ;;  %s344_s24 = sand.u32 1, %s532_s18  }
 0x1bf   : > { %s345_s7 = scalar_lea.sflag [#allocation4], %s344_s24 }
 0x1c0   : > { %p414_p7 = pnand %p417_p6, %p633_p8 }
 0x1c2   : > { %p415_p9 = pneg %p414_p7 }
 0x1c4   : > { %527 = dma.done.wait (%p415_p9), %s345_s7, 128  }
 0x1c5   : > { %529 = vsyncadd (%p415_p9), %s345_s7, 4294967168  ;;  %s18_s23 = sadd.s32 1, %s552_s23   ;;  %s750_s18 = smov %s536_s19 }
 0x1c6   : > { %p15_p10 = scmp.ge.s32.totalorder %s18_s23, 4   ;;  %s751_s19 = smov %s540_s20 }
 0x1c7   : > { %s752_s20 = smov %s639_s6  ;;  %s753_s21 = smov %s548_s22 }
 0x1c8   : > { %s754_s22 = smov %s756_s26  ;;  %17 = sbr.rel (!%p15_p10) target bundleno = 4 (0x4), region = 83 }
 0x1cd   :  { %351 = vsyncpa [#allocation4], 1 }
 0x1ce   :  { %353 = vsyncpa [#allocation4 + $0x1], 1 }

// kernel: _balanced_step_impl.1
= control target key start
LH: loop header
LB: loop body
LE: loop exit
PB: predicated region body
PF: predicated region fallthrough
CT: control target
= control target key end

     0   :  { %10 = vsyncpa [#allocation4], 0  ;;  %s742_s0 = inlined_call_operand.vmem [shape: f32[16,128], index: 0, kind: input, shape index: {}]   ;;  %s743_s1 = inlined_call_operand.vmem [shape: f32[128,128], index: 1, kind: input, shape index: {}]   ;;  %s744_s2 = inlined_call_operand.vmem [shape: f32[1,128], index: 2, kind: input, shape index: {}]   ;;  %s745_s3 = inlined_call_operand.vmem [shape: f32[1,128], index: 3, kind: input, shape index: {}]   ;;  %s746_s4 = inlined_call_operand.vmem [shape: f32[1,128], index: 4, kind: input, shape index: {}]   ;;  %s747_s5 = inlined_call_operand.hbm [shape: f32[16,128], index: 5, kind: output, shape index: {}]  }
   0x1   :  { %12 = vsyncpa [#allocation4 + $0x1], 0  ;;  %s586_s18 = smov 0   ;;  %s588_s19 = smov 0  }
   0x2   :  { %s590_s20 = smov 0   ;;  %s592_s21 = smov 0  }
   0x3   :  { %s594_s22 = smov 0   ;;  %s596_s23 = smov 0  }
   0x4 LB: > { %s400_s24 = sadd.s32 4294967295, %s552_s23   ;;  %s401_s25 = sadd.s32 4294967294, %s552_s23   ;;  %s552_s23 = sphi %s596_s23, %s18_s23   ;;  %s548_s22 = sphi %s594_s22, %s754_s22   ;;  %s544_s21 = sphi %s592_s21, %s753_s21   ;;  %s540_s20 = sphi %s590_s20, %s752_s20   ;;  %s536_s19 = sphi %s588_s19, %s751_s19   ;;  %s532_s18 = sphi %s586_s18, %s750_s18  }
   0x5   : > { %s30_s26 = sadd.s32 1, %s548_s22  ;;  %s147_s27 = sadd.s32 1, %s540_s20 }
   0x6   : > { %p32_p0 = scmp.ge.s32.totalorder %s30_s26, 2  ;;  %p157_p1 = scmp.ne.s32.totalorder %s540_s20, %s536_s19 }
   0x7   : > { %p158_p2 = scmp.eq.s32.totalorder %s400_s24, 1  ;;  %p163_p3 = scmp.ne.s32.totalorder %s536_s19, %s532_s18 }
   0x8   : > { %s756_s26 = smov (%p32_p0, %s30_s26), 0  ;;  %p164_p5 = scmp.eq.s32.totalorder %s401_s25, 1 }
   0x9   : > { %p626_p4 = por %p158_p2, %p157_p1  ;;  %s144_s29 = ssub.s32 %s548_s22, %s756_s26 }
   0xa   : > { %p404_p6 = scmp.ge.s32.totalorder %s552_s23, 1  ;;  %p145_p7 = scmp.eq.s32.totalorder %s144_s29, 0 }
   0xb   : > { %p633_p8 = por %p164_p5, %p163_p3  ;;  %p201_p9 = scmp.lt.s32.totalorder %s552_s23, 3 }
   0xc   : > { %s639_s6 = scalar_select %p145_p7, %s540_s20, %s147_s27  }
   0xd   : > { %p202_p10 = pnand %p404_p6, %p201_p9 }
   0xe   : > { %p228_p11 = scmp.lt.s32.totalorder (!%p202_p10), %s544_s21, 1  ;;  %s225_s24 = sand.u32 (!%p202_p10), 1, %s536_s19  }
   0xf   : > { %205 = sbr.rel (%p202_p10) target bundleno = 446 (0x1be), region = 40  ;;  %s405_s29 = sshll.u32 (!%p202_p10), %s225_s24, 3 }
  0x10   : > { %s408_s7 = sshll.u32 (!%p202_p10), %s544_s21, 3 }
  0x11   : > { %s328_s10 = scalar_lea.hbm (!%p202_p10), %s747_s5, %s408_s7 }
  0x12   : > { %s332_s13 = sshll.u32 (!%p202_p10), %s328_s10, 4  ;;  %s333_s13 = int_to_ptr.hbm [resolvable:$true] %s332_s13 }
  0x13   : > { %s488_s15 = sshra.s32 (!%p202_p10), %s333_s13, 4  ;;  %s489_s15 = int_to_ptr.hbm [resolvable:$true] %s488_s15 }
  0x14   : > { %v254_v0 = vld [vmem:[%s743_s1 + $0x78] sm:$0xff]  ;;  %v253_v1 = vld [vmem:[%s743_s1 + $0x70] sm:$0xff]  ;;  %v252_v2 = vld [vmem:[%s743_s1 + $0x68] sm:$0xff]  ;;  %s229_s14 = scalar_select %p228_p11, %s544_s21, 1  ;;  %vm236_vm0 = vcmask 7168   ;;  %v554_v17 = vmov 0.0  }
  0x15   : > { %255 = vmatpush.msra.mxu0 %v254_v0  ;;  %v251_v3 = vld [vmem:[%s743_s1 + $0x60] sm:$0xff]  ;;  %v250_v4 = vld [vmem:[%s743_s1 + $0x58] sm:$0xff]  ;;  %v249_v5 = vld [vmem:[%s743_s1 + $0x50] sm:$0xff]  ;;  %237 = vst.msk [vmem:[#allocation2] sm:$0xff] %vm236_vm0, %v554_v17  ;;  %v555_v31 = vmov 0   ;;  %s490_s16 = scalar_lea.hbm %s489_s15, 8  ;;  %p495_p1 = scmp.lt.s32.totalorder %s489_s15, %s747_s5 }
  0x16   : > { %v248_v6 = vld [vmem:[%s743_s1 + $0x48] sm:$0xff]  ;;  %v247_v7 = vld [vmem:[%s743_s1 + $0x40] sm:$0xff]  ;;  %v246_v8 = vld [vmem:[%s743_s1 + $0x38] sm:$0xff]  ;;  %s406_s25 = sshll.u32 %s229_s14, 3  ;;  %468 = vset.pattern.permute.xlu0 %v555_v31  ;;  %s318_s14 = scalar_lea.sflag [#allocation4], %s225_s24 }
  0x17   : > { %256 = vmatpush.msra.mxu0 %v253_v1  ;;  %v245_v9 = vld [vmem:[%s743_s1 + $0x30] sm:$0xff]  ;;  %v244_v10 = vld [vmem:[%s743_s1 + $0x28] sm:$0xff]  ;;  %v243_v11 = vld [vmem:[%s743_s1 + $0x20] sm:$0xff]  ;;  %s231_s11 = scalar_lea.vmem %s742_s0, %s406_s25  ;;  %p491_p12 = scmp.ne.s32.totalorder %s489_s15, %s490_s16 }
  0x18   : > { %v242_v12 = vld [vmem:[%s743_s1 + $0x18] sm:$0xff]  ;;  %v241_v13 = vld [vmem:[%s743_s1 + $0x10] sm:$0xff]  ;;  %v240_v14 = vld [vmem:[%s743_s1 + $0x8] sm:$0xff]  ;;  %s494_s25 = scalar_lea.hbm %s747_s5, 16 }
  0x19   : > { %257 = vmatpush.msra.mxu0 %v252_v2  ;;  %v239_v15 = vld [vmem:[%s743_s1] sm:$0xff]  ;;  %p492_p13 = pnand %p491_p12, %p626_p4  ;;  %p496_p2 = scmp.lt.s32.totalorder %s494_s25, %s490_s16 }
  0x1a   : > { %v238_v16 = vld [vmem:[%s231_s11] sm:$0xff]  ;;  %s227_s11 = scalar_lea.vmem [#allocation3], %s405_s29 }
  0x1b   : > { %258 = vmatpush.msra.mxu0 %v251_v3  ;;  %v470_v18 = vld [vmem:[%s745_s3] ss:$0 sm:$0xff]  ;;  %s330_s12 = sshll.u32 %s227_s11, 4  ;;  %p493_p0 = pneg %p492_p13  ;;  %s331_s12 = int_to_ptr.vmem [resolvable:$true] %s330_s12 }
  0x1c   : > { %v469_v22 = vld [vmem:[%s744_s2] ss:$0 sm:$0xff]  ;;  %p497_p3 = por %p496_p2, %p495_p1 }
  0x1d   : > { %259 = vmatpush.msra.mxu0 %v250_v4  ;;  %v296_v32 = vld [vmem:[#allocation2] sm:$0xff] }
  0x1e   : > { %v471_v36 = vld [vmem:[%s746_s4] ss:$0 sm:$0xff]  ;;  %p498_p5 = pnand %p497_p3, %p493_p0 }
  0x1f   : > { %260 = vmatpush.msra.mxu0 %v249_v5  ;;  %v307_v37 = vsub.f32 %v471_v36, %v238_v16 }
  0x21   : > { %261 = vmatpush.msra.mxu0 %v248_v6 }
  0x23   : > { %262 = vmatpush.msra.mxu0 %v247_v7 }
  0x25   : > { %263 = vmatpush.msra.mxu0 %v246_v8 }
  0x27   : > { %264 = vmatpush.msra.mxu0 %v245_v9 }
  0x29   : > { %265 = vmatpush.msra.mxu0 %v244_v10 }
  0x2b   : > { %266 = vmatpush.msra.mxu0 %v243_v11 }
  0x2d   : > { %267 = vmatpush.msra.mxu0 %v242_v12 }
  0x2f   : > { %268 = vmatpush.msra.mxu0 %v241_v13 }
  0x31   : > { %269 = vmatpush.msra.mxu0 %v240_v14 }
  0x33   : > { %270 = vmatpush.msra.mxu0 %v239_v15 }
  0x34   : > { %271 = vmatmul.f32.vlgmr.msra.gmra.mxu0 %v238_v16 }
  0xb1   : > { %v272_v19 = vpop.f32.mrf.mxu0 }
  0xb2   : > { %v285_v20 = vsub.f32 %v470_v18, %v272_v19  ;;  %v279_v24 = vsub.f32 %v272_v19, %v469_v22 }
  0xb4   : > { %v286_v21 = vmin.f32 %v285_v20, -1e-09  ;;  %v291_v27 = vsub.f32 0.0, %v279_v24  ;;  %vm280_vm1 = vcmp.ge.f32.partialorder %v279_v24, 0.0 }
  0xb6   : > { %472 = vrcp.f32 %v286_v21 }
  0xbc   : > { %v473_v23 = vpop.eup %472 }
  0xbd   : > { %v288_v25 = vmul.f32 %v473_v23, %v286_v21 }
  0xbf   : > { %v289_v26 = vsub.f32 2.0, %v288_v25 }
  0xc1   : > { %v290_v28 = vmul.f32 %v473_v23, %v289_v26 }
  0xc3   : > { %v292_v29 = vmul.f32 %v291_v27, %v290_v28 }
  0xc5   : > { %v293_v30 = vsel %vm280_vm1, %v292_v29, 0.0 }
  0xc6   : > { %294 = vmax.xlane.f32.xlu0 %v293_v30 }
 0x139   : > { %v295_v33 = vpop.xlane.xlu0 %294 }
 0x13a   : > { %v297_v34 = vmax.f32 %v296_v32, %v295_v33 }
 0x13c   : > { %299 = vst.msk [vmem:[#allocation2] sm:$0xff] %vm236_vm0, %v297_v34 }
 0x143   : > { %v308_v35 = vld [vmem:[#allocation2] sm:$0xff] }
 0x144   : > { %311 = vperm.xlu0 %468, %v308_v35  }
 0x1b6   : > { %v312_v38 = vpop.permute.xlu0 %311 }
 0x1b7   : > { %v314_v39 = vmul.f32 %v312_v38, %v307_v37 }
 0x1b9   : > { %v315_v40 = vadd.f32 %v314_v39, %v238_v16 }
 0x1bb   : > { %316 = vst [vmem:[%s227_s11] sm:$0xff] %v315_v40 }
 0x1bc   : > { %501 = shalt.err (!%p498_p5)
}
 0x1bd   : > { %411 = dma.vmem_to_hbm [thread:$0]  (%p626_p4), %s331_s12, 128, %s333_s13, %s318_s14  }
 0x1be PF: > { %p417_p6 = scmp.ge.s32.totalorder %s552_s23, 2  ;;  %s344_s24 = sand.u32 1, %s532_s18  }
 0x1bf   : > { %s345_s7 = scalar_lea.sflag [#allocation4], %s344_s24 }
 0x1c0   : > { %p414_p7 = pnand %p417_p6, %p633_p8 }
 0x1c2   : > { %p415_p9 = pneg %p414_p7 }
 0x1c4   : > { %527 = dma.done.wait (%p415_p9), %s345_s7, 128  }
 0x1c5   : > { %529 = vsyncadd (%p415_p9), %s345_s7, 4294967168  ;;  %s18_s23 = sadd.s32 1, %s552_s23   ;;  %s750_s18 = smov %s536_s19 }
 0x1c6   : > { %p15_p10 = scmp.ge.s32.totalorder %s18_s23, 4   ;;  %s751_s19 = smov %s540_s20 }
 0x1c7   : > { %s752_s20 = smov %s639_s6  ;;  %s753_s21 = smov %s548_s22 }
 0x1c8   : > { %s754_s22 = smov %s756_s26  ;;  %17 = sbr.rel (!%p15_p10) target bundleno = 4 (0x4), region = 83 }
 0x1cd   :  { %351 = vsyncpa [#allocation4], 1 }
 0x1ce   :  { %353 = vsyncpa [#allocation4 + $0x1], 1 }

</bundles_post_ra>
